<compile_context>
chip_gen: v6e
topology: v6e:2x2x1
jax: 0.10.0
libtpu: 0.0.40
codegen_flags: <defaults>
</compile_context>

<pallas_src>
import jax
import jax.numpy as jnp
from jax.experimental import pallas as pl
from jax.experimental.pallas import tpu as pltpu


def _round_up(n: int, m: int) -> int:
    return ((n + m - 1) // m) * m


def _mlp_kernel(x_ref, w1_ref, b1_ref, w2_ref, b2_ref,
                w3_ref, b3_ref, w4_ref, b4_ref, o_ref):
    """Fused 4-layer MLP, feature-major: activations are (features, batch_tile)."""
    cdt = w1_ref.dtype                      # matmul-input (compute) dtype
    x = x_ref[...]                          # (26, T)

    h = jnp.dot(w1_ref[...], x, preferred_element_type=jnp.float32) + b1_ref[...]
    h = jnp.maximum(h, 0.0).astype(cdt)     # (100, T)

    h = jnp.dot(w2_ref[...], h, preferred_element_type=jnp.float32) + b2_ref[...]
    h = jnp.maximum(h, 0.0).astype(cdt)     # (100, T)

    h = jnp.dot(w3_ref[...], h, preferred_element_type=jnp.float32) + b3_ref[...]
    h = jnp.maximum(h, 0.0).astype(cdt)     # (20, T)

    out = jnp.dot(w4_ref[...], h, preferred_element_type=jnp.float32) + b4_ref[...]
    o_ref[...] = out.astype(o_ref.dtype)    # (4, T) lane-dense store


def controller_forward(x, params, *, batch_tile=256, compute_dtype=jnp.bfloat16):
    """x: (B, 26) float32 -> (B, 4) float32.

    Weights are stored in PyTorch (out_features, in_features) layout; biases as
    (out_features, 1) columns (they broadcast across the batch/lane axis).
    """
    w1, b1, w2, b2, w3, b3, w4, b4 = params
    B, d_in = x.shape
    d_out = w4.shape[0]

    # Batch tile: multiple of 128; for larger batches keep >= 2 grid steps so
    # both v7x TensorCores are used (perf-neutral on v5e/v6e).
    bt = max(128, _round_up(int(batch_tile), 128))
    if B >= 256:
        bt = min(bt, _round_up(-(-B // 2), 128))
    Bp = _round_up(B, bt)
    grid = (Bp // bt,)

    # Layout plumbing in the wrapper: pad batch, go feature-major (lane = batch),
    # cast matmul inputs to the compute dtype. Biases stay f32.
    xt = jnp.pad(x, ((0, Bp - B), (0, 0))).T.astype(compute_dtype)      # (26, Bp)
    w1c, w2c, w3c, w4c = (w.astype(compute_dtype) for w in (w1, w2, w3, w4))
    b1f, b2f, b3f, b4f = (b.astype(jnp.float32) for b in (b1, b2, b3, b4))

    def full_spec(a):
        # Full-array block, constant index -> DMA'd once, VMEM-resident.
        return pl.BlockSpec(a.shape, lambda i: (0, 0))

    grid_spec = pltpu.PrefetchScalarGridSpec(
        num_scalar_prefetch=0,
        grid=grid,
        in_specs=[
            pl.BlockSpec((d_in, bt), lambda i: (0, i)),     # x, feature-major
            full_spec(w1c), full_spec(b1f),
            full_spec(w2c), full_spec(b2f),
            full_spec(w3c), full_spec(b3f),
            full_spec(w4c), full_spec(b4f),
        ],
        out_specs=pl.BlockSpec((d_out, bt), lambda i: (0, i)),
    )

    out_t = pl.pallas_call(
        _mlp_kernel,
        out_shape=jax.ShapeDtypeStruct((d_out, Bp), jnp.float32),
        grid_spec=grid_spec,
        compiler_params=pltpu.CompilerParams(
            dimension_semantics=("parallel",)),
    )(xt, w1c, b1f, w2c, b2f, w3c, b3f, w4c, b4f)

    return out_t[:, :B].T                                    # (B, 4) float32


def init_params(key):
    """torch.nn.Linear-style init (U[-1/sqrt(fan_in), +1/sqrt(fan_in)]).
    Weights stored as (out, in); biases as (out, 1)."""
    dims = [(26, 100), (100, 100), (100, 20), (20, 4)]
    params = []
    for fan_in, fan_out in dims:
        key, kw, kb = jax.random.split(key, 3)
        bound = 1.0 / jnp.sqrt(fan_in)
        w = jax.random.uniform(kw, (fan_out, fan_in), jnp.float32, -bound, bound)
        b = jax.random.uniform(kb, (fan_out, 1), jnp.float32, -bound, bound)
        params += [w, b]
    return tuple(params)


def reference_forward(x, params):
    w1, b1, w2, b2, w3, b3, w4, b4 = params
    h = jax.nn.relu(x @ w1.T + b1[:, 0])
    h = jax.nn.relu(h @ w2.T + b2[:, 0])
    h = jax.nn.relu(h @ w3.T + b3[:, 0])
    return h @ w4.T + b4[:, 0]


if __name__ == "__main__":
    key = jax.random.PRNGKey(0)
    key, kx = jax.random.split(key)
    B = 8
    x = jax.random.normal(kx, (B, 26), dtype=jnp.float32)
    params = init_params(key)

    ref = reference_forward(x, params)

    # f32 compute path: tight check against the f32 reference.
    out_f32 = jax.block_until_ready(
        controller_forward(x, params, compute_dtype=jnp.float32))
    assert out_f32.shape == (B, 4)
    assert jnp.allclose(out_f32, ref, atol=1e-4, rtol=1e-4), "f32 mismatch vs ref"

    # Default bf16-MXU path: looser tolerance (bf16 matmul inputs, f32 accum).
    out_bf16 = jax.block_until_ready(controller_forward(x, params))
    assert out_bf16.shape == (B, 4)
    assert jnp.allclose(out_bf16, ref, atol=5e-2, rtol=5e-2), "bf16 mismatch vs ref"

    # Non-multiple batch: exercises wrapper padding + a multi-step parallel grid.
    key, kx2 = jax.random.split(key)
    B2 = 300
    x2 = jax.random.normal(kx2, (B2, 26), dtype=jnp.float32)
    out2 = jax.block_until_ready(controller_forward(x2, params))
    ref2 = reference_forward(x2, params)
    assert out2.shape == (B2, 4)
    assert jnp.allclose(out2, ref2, atol=5e-2, rtol=5e-2), "padded-batch mismatch"

    print("KERNEL_OK")
</pallas_src>

<mosaic_0001>
module attributes {stable_mosaic.version = 11 : i64} {
  func.func @_mlp_kernel(%arg0: i32, %arg1: memref<26x256xf32, #tpu.memory_space<vmem>>, %arg2: memref<100x26xf32, #tpu.memory_space<vmem>>, %arg3: memref<100x1xf32, #tpu.memory_space<vmem>>, %arg4: memref<100x100xf32, #tpu.memory_space<vmem>>, %arg5: memref<100x1xf32, #tpu.memory_space<vmem>>, %arg6: memref<20x100xf32, #tpu.memory_space<vmem>>, %arg7: memref<20x1xf32, #tpu.memory_space<vmem>>, %arg8: memref<4x20xf32, #tpu.memory_space<vmem>>, %arg9: memref<4x1xf32, #tpu.memory_space<vmem>>, %arg10: memref<4x256xf32, #tpu.memory_space<vmem>>) attributes {dimension_semantics = [#tpu.dimension_semantics<parallel>], iteration_bounds = array<i64: 1>, scalar_prefetch = 0 : i64, scratch_operands = 0 : i64, tpu.core_type = #tpu.core_type<tc>, window_params = [{transform_indices = @transform_0, window_bounds = array<i64: 26, 256>}, {pipeline_mode = #tpu.pipeline_mode<synchronous>, transform_indices = @transform_1, window_bounds = array<i64: 100, 26>}, {pipeline_mode = #tpu.pipeline_mode<synchronous>, transform_indices = @transform_2, window_bounds = array<i64: 100, 1>}, {pipeline_mode = #tpu.pipeline_mode<synchronous>, transform_indices = @transform_3, window_bounds = array<i64: 100, 100>}, {pipeline_mode = #tpu.pipeline_mode<synchronous>, transform_indices = @transform_4, window_bounds = array<i64: 100, 1>}, {pipeline_mode = #tpu.pipeline_mode<synchronous>, transform_indices = @transform_5, window_bounds = array<i64: 20, 100>}, {pipeline_mode = #tpu.pipeline_mode<synchronous>, transform_indices = @transform_6, window_bounds = array<i64: 20, 1>}, {pipeline_mode = #tpu.pipeline_mode<synchronous>, transform_indices = @transform_7, window_bounds = array<i64: 4, 20>}, {pipeline_mode = #tpu.pipeline_mode<synchronous>, transform_indices = @transform_8, window_bounds = array<i64: 4, 1>}, {transform_indices = @transform_9, window_bounds = array<i64: 4, 256>}]} {
    %c0 = arith.constant 0 : index
    %c0_0 = arith.constant 0 : index
    %0 = vector.load %arg1[%c0, %c0_0] : memref<26x256xf32, #tpu.memory_space<vmem>>, vector<26x256xf32>
    %c0_1 = arith.constant 0 : index
    %c0_2 = arith.constant 0 : index
    %1 = vector.load %arg2[%c0_1, %c0_2] : memref<100x26xf32, #tpu.memory_space<vmem>>, vector<100x26xf32>
    %cst = arith.constant dense<0.000000e+00> : vector<100x256xf32>
    %2 = tpu.matmul %1, %0, %cst {dimension_numbers = #tpu.dot_dimension_numbers<[1], [0], [0], [1], [0, 0, 1, 1], [], []>} : vector<100x26xf32>, vector<26x256xf32>, vector<100x256xf32> -> vector<100x256xf32>
    %c0_3 = arith.constant 0 : index
    %c0_4 = arith.constant 0 : index
    %3 = vector.load %arg3[%c0_3, %c0_4] : memref<100x1xf32, #tpu.memory_space<vmem>>, vector<100x1xf32>
    %4 = vector.broadcast %3 : vector<100x1xf32> to vector<100x256xf32>
    %5 = arith.addf %2, %4 : vector<100x256xf32>
    %cst_5 = arith.constant 0.000000e+00 : f32
    %6 = vector.broadcast %cst_5 : f32 to vector<100x256xf32>
    %7 = arith.maximumf %5, %6 : vector<100x256xf32>
    %c0_6 = arith.constant 0 : index
    %c0_7 = arith.constant 0 : index
    %8 = vector.load %arg4[%c0_6, %c0_7] : memref<100x100xf32, #tpu.memory_space<vmem>>, vector<100x100xf32>
    %cst_8 = arith.constant dense<0.000000e+00> : vector<100x256xf32>
    %9 = tpu.matmul %8, %7, %cst_8 {dimension_numbers = #tpu.dot_dimension_numbers<[1], [0], [0], [1], [0, 0, 1, 1], [], []>} : vector<100x100xf32>, vector<100x256xf32>, vector<100x256xf32> -> vector<100x256xf32>
    %c0_9 = arith.constant 0 : index
    %c0_10 = arith.constant 0 : index
    %10 = vector.load %arg5[%c0_9, %c0_10] : memref<100x1xf32, #tpu.memory_space<vmem>>, vector<100x1xf32>
    %11 = vector.broadcast %10 : vector<100x1xf32> to vector<100x256xf32>
    %12 = arith.addf %9, %11 : vector<100x256xf32>
    %cst_11 = arith.constant 0.000000e+00 : f32
    %13 = vector.broadcast %cst_11 : f32 to vector<100x256xf32>
    %14 = arith.maximumf %12, %13 : vector<100x256xf32>
    %c0_12 = arith.constant 0 : index
    %c0_13 = arith.constant 0 : index
    %15 = vector.load %arg6[%c0_12, %c0_13] : memref<20x100xf32, #tpu.memory_space<vmem>>, vector<20x100xf32>
    %cst_14 = arith.constant dense<0.000000e+00> : vector<20x256xf32>
    %16 = tpu.matmul %15, %14, %cst_14 {dimension_numbers = #tpu.dot_dimension_numbers<[1], [0], [0], [1], [0, 0, 1, 1], [], []>} : vector<20x100xf32>, vector<100x256xf32>, vector<20x256xf32> -> vector<20x256xf32>
    %c0_15 = arith.constant 0 : index
    %c0_16 = arith.constant 0 : index
    %17 = vector.load %arg7[%c0_15, %c0_16] : memref<20x1xf32, #tpu.memory_space<vmem>>, vector<20x1xf32>
    %18 = vector.broadcast %17 : vector<20x1xf32> to vector<20x256xf32>
    %19 = arith.addf %16, %18 : vector<20x256xf32>
    %cst_17 = arith.constant 0.000000e+00 : f32
    %20 = vector.broadcast %cst_17 : f32 to vector<20x256xf32>
    %21 = arith.maximumf %19, %20 : vector<20x256xf32>
    %c0_18 = arith.constant 0 : index
    %c0_19 = arith.constant 0 : index
    %22 = vector.load %arg8[%c0_18, %c0_19] : memref<4x20xf32, #tpu.memory_space<vmem>>, vector<4x20xf32>
    %cst_20 = arith.constant dense<0.000000e+00> : vector<4x256xf32>
    %23 = tpu.matmul %22, %21, %cst_20 {dimension_numbers = #tpu.dot_dimension_numbers<[1], [0], [0], [1], [0, 0, 1, 1], [], []>} : vector<4x20xf32>, vector<20x256xf32>, vector<4x256xf32> -> vector<4x256xf32>
    %c0_21 = arith.constant 0 : index
    %c0_22 = arith.constant 0 : index
    %24 = vector.load %arg9[%c0_21, %c0_22] : memref<4x1xf32, #tpu.memory_space<vmem>>, vector<4x1xf32>
    %25 = vector.broadcast %24 : vector<4x1xf32> to vector<4x256xf32>
    %26 = arith.addf %23, %25 : vector<4x256xf32>
    %c0_23 = arith.constant 0 : index
    %c0_24 = arith.constant 0 : index
    %27 = vector.load %arg10[%c0_23, %c0_24] : memref<4x256xf32, #tpu.memory_space<vmem>>, vector<4x256xf32>
    tpu.vector_store %arg10[%c0_23, %c0_24], %26 {strides = array<i32>} : memref<4x256xf32, #tpu.memory_space<vmem>>, vector<4x256xf32>,
    return
  }
  func.func @transform_0(%arg0: i32) -> (i32, i32) {
    %c0_i32 = arith.constant 0 : i32
    %c0_i32_0 = arith.constant 0 : i32
    return %c0_i32, %arg0 : i32, i32
  }
  func.func @transform_1(%arg0: i32) -> (i32, i32) {
    %c0_i32 = arith.constant 0 : i32
    %c0_i32_0 = arith.constant 0 : i32
    %c0_i32_1 = arith.constant 0 : i32
    return %c0_i32, %c0_i32_0 : i32, i32
  }
  func.func @transform_2(%arg0: i32) -> (i32, i32) {
    %c0_i32 = arith.constant 0 : i32
    %c0_i32_0 = arith.constant 0 : i32
    %c0_i32_1 = arith.constant 0 : i32
    return %c0_i32, %c0_i32_0 : i32, i32
  }
  func.func @transform_3(%arg0: i32) -> (i32, i32) {
    %c0_i32 = arith.constant 0 : i32
    %c0_i32_0 = arith.constant 0 : i32
    %c0_i32_1 = arith.constant 0 : i32
    return %c0_i32, %c0_i32_0 : i32, i32
  }
  func.func @transform_4(%arg0: i32) -> (i32, i32) {
    %c0_i32 = arith.constant 0 : i32
    %c0_i32_0 = arith.constant 0 : i32
    %c0_i32_1 = arith.constant 0 : i32
    return %c0_i32, %c0_i32_0 : i32, i32
  }
  func.func @transform_5(%arg0: i32) -> (i32, i32) {
    %c0_i32 = arith.constant 0 : i32
    %c0_i32_0 = arith.constant 0 : i32
    %c0_i32_1 = arith.constant 0 : i32
    return %c0_i32, %c0_i32_0 : i32, i32
  }
  func.func @transform_6(%arg0: i32) -> (i32, i32) {
    %c0_i32 = arith.constant 0 : i32
    %c0_i32_0 = arith.constant 0 : i32
    %c0_i32_1 = arith.constant 0 : i32
    return %c0_i32, %c0_i32_0 : i32, i32
  }
  func.func @transform_7(%arg0: i32) -> (i32, i32) {
    %c0_i32 = arith.constant 0 : i32
    %c0_i32_0 = arith.constant 0 : i32
    %c0_i32_1 = arith.constant 0 : i32
    return %c0_i32, %c0_i32_0 : i32, i32
  }
  func.func @transform_8(%arg0: i32) -> (i32, i32) {
    %c0_i32 = arith.constant 0 : i32
    %c0_i32_0 = arith.constant 0 : i32
    %c0_i32_1 = arith.constant 0 : i32
    return %c0_i32, %c0_i32_0 : i32, i32
  }
  func.func @transform_9(%arg0: i32) -> (i32, i32) {
    %c0_i32 = arith.constant 0 : i32
    %c0_i32_0 = arith.constant 0 : i32
    return %c0_i32, %arg0 : i32, i32
  }
}

</mosaic_0001>

<bundles_post_ra>
// kernel: tpu_custom_call.1
= control target key start
LH: loop header
LB: loop body
LE: loop exit
PB: predicated region body
PF: predicated region fallthrough
CT: control target
= control target key end

     0   :  { %vm172_vm0 = vcmask 1041408   ;;  %v952_v5 = vmov 0.0   ;;  %v953_v7 = vmov 0   ;;  %vm132_vm1 = vcmask 211968   ;;  %s1337_s0 = inlined_call_operand.vmem [shape: f32[26,256], index: 0, kind: input, shape index: {}]   ;;  %s1338_s1 = inlined_call_operand.vmem [shape: f32[100,26], index: 1, kind: input, shape index: {}]   ;;  %s1339_s2 = inlined_call_operand.vmem [shape: f32[100,1], index: 2, kind: input, shape index: {}]   ;;  %s1340_s3 = inlined_call_operand.vmem [shape: f32[100,100], index: 3, kind: input, shape index: {}]   ;;  %s1341_s4 = inlined_call_operand.vmem [shape: f32[100,1], index: 4, kind: input, shape index: {}]   ;;  %s1342_s5 = inlined_call_operand.vmem [shape: f32[20,100], index: 5, kind: input, shape index: {}]   ;;  %s1343_s6 = inlined_call_operand.vmem [shape: f32[20,1], index: 6, kind: input, shape index: {}]   ;;  %s1344_s7 = inlined_call_operand.vmem [shape: f32[4,20], index: 7, kind: input, shape index: {}]   ;;  %s1345_s8 = inlined_call_operand.vmem [shape: f32[4,1], index: 8, kind: input, shape index: {}]   ;;  %s1346_s9 = inlined_call_operand.hbm [shape: f32[4,256], index: 9, kind: output, shape index: {}]  }
   0x1   :  { %v40_v0 = vld [vmem:[%s1337_s0 + $0x38] sm:$0x3]  ;;  %v39_v1 = vld [vmem:[%s1337_s0 + $0x30] sm:$0x3]  ;;  %v38_v2 = vld [vmem:[%s1337_s0 + $0x28] sm:$0xff]  ;;  %243 = vmatprep.mubr.f32.mxu0 %v952_v5  ;;  %928 = vset.pattern.permute.xlu0 %v953_v7 }
   0x2   :  { %887 = vmatprep.subr.msk.mxu0 %vm172_vm0, %v40_v0  ;;  %v37_v3 = vld [vmem:[%s1337_s0 + $0x20] sm:$0xff]  ;;  %v36_v4 = vld [vmem:[%s1337_s0 + $0x18] sm:$0xff]  ;;  %v35_v6 = vld [vmem:[%s1337_s0 + $0x10] sm:$0xff]  ;;  %929 = vset.pattern.permute.xlu1 %v953_v7 }
   0x3   :  { %888 = vmatpush1.msk.msra.mxu0 %vm172_vm0, %v39_v1  ;;  %v34_v8 = vld [vmem:[%s1337_s0 + $0x8] sm:$0xff]  ;;  %v33_v9 = vld [vmem:[%s1337_s0] sm:$0xff]  ;;  %550 = vmatprep.mubr.f32.mxu1 %v952_v5  ;;  %v64_v12 = vld [vmem:[%s1339_s2 + $0x50] sm:$0xff] }
   0x4   :  { %205 = vmatprep.subr.mxu0 %v38_v2  ;;  %v41_v10 = vld [vmem:[%s1338_s1] sm:$0xff]  ;;  %v65_v13 = vld [vmem:[%s1339_s2 + $0x58] sm:$0xff]  ;;  %119 = vperm.xlu1 %929, %v64_v12   ;;  %v63_v14 = vld [vmem:[%s1339_s2 + $0x48] sm:$0xff] }
   0x5   :  { %206 = vmatpush1.msra.mxu0 %v37_v3  ;;  %v66_v11 = vld [vmem:[%s1339_s2 + $0x60] sm:$0xf]  ;;  %v42_v15 = vld [vmem:[%s1338_s1 + $0x8] sm:$0xff]  ;;  %v61_v17 = vld [vmem:[%s1339_s2 + $0x38] sm:$0xff] }
   0x6   :  { %207 = vmatprep.subr.mxu0 %v36_v4  ;;  %129 = vperm.xlu0 %928, %v66_v11   ;;  %v62_v16 = vld [vmem:[%s1339_s2 + $0x40] sm:$0xff]  ;;  %v43_v18 = vld [vmem:[%s1338_s1 + $0x10] sm:$0xff]  ;;  %v59_v20 = vld [vmem:[%s1339_s2 + $0x28] sm:$0xff] }
   0x7   :  { %208 = vmatpush1.msra.mxu0 %v35_v6  ;;  %v60_v19 = vld [vmem:[%s1339_s2 + $0x30] sm:$0xff] }
   0x8   :  { %209 = vmatprep.subr.mxu0 %v34_v8  ;;  %114 = vperm.xlu1 %929, %v63_v14  }
   0x9   :  { %210 = vmatpush1.msra.mxu0 %v33_v9 }
   0xa   :  { %889 = vmatmul.mubr.msk.f32.vlgmr.msra.gmra.mxu0 %vm132_vm1, %v41_v10  ;;  %124 = vperm.xlu0 %928, %v65_v13  }
   0xb   :  { %249 = vmatprep.mubr.f32.mxu0 %v952_v5 }
   0xc   :  { %104 = vperm.xlu1 %929, %v61_v17  }
   0xe   :  { %890 = vmatmul.mubr.msk.f32.gmra.mxu0 %vm132_vm1, %v42_v15  ;;  %109 = vperm.xlu0 %928, %v62_v16  }
   0xf   :  { %255 = vmatprep.mubr.f32.mxu0 %v952_v5 }
  0x12   :  { %891 = vmatmul.mubr.msk.f32.gmra.mxu0 %vm132_vm1, %v43_v18 }
  0x13   :  { %14 = vsyncpa [#allocation3], 0  ;;  %261 = vmatprep.mubr.f32.mxu0 %v952_v5  ;;  %v44_v21 = vld [vmem:[%s1338_s1 + $0x18] sm:$0xff]  ;;  %99 = vperm.xlu0 %928, %v60_v19   ;;  %v58_v22 = vld [vmem:[%s1339_s2 + $0x20] sm:$0xff]  ;;  %vm479_vm2 = vcmask 1043456   ;;  %vm439_vm3 = vcmask 818176  }
  0x14   :  { %94 = vperm.xlu1 %929, %v59_v20   ;;  %v57_v23 = vld [vmem:[%s1339_s2 + $0x18] sm:$0xff]  ;;  %v45_v24 = vld [vmem:[%s1338_s1 + $0x20] sm:$0xff]  ;;  %v56_v25 = vld [vmem:[%s1339_s2 + $0x10] sm:$0xff]  ;;  %vm787_vm4 = vcmask 162816   ;;  %s954_s22 = smov [#allocation2]  }
  0x15   :  { %v55_v26 = vld [vmem:[%s1339_s2 + $0x8] sm:$0xff]  ;;  %v54_v28 = vld [vmem:[%s1339_s2] sm:$0xff]  ;;  %v47_v30 = vld [vmem:[%s1338_s1 + $0x30] sm:$0xff]  ;;  %s879_s23 = sshll.u32 %s954_s22, 4  ;;  %s880_s23 = int_to_ptr.vmem [resolvable:$true] %s879_s23 }
  0x16   :  { %892 = vmatmul.mubr.msk.f32.gmra.mxu0 %vm132_vm1, %v44_v21  ;;  %v46_v27 = vld [vmem:[%s1338_s1 + $0x28] sm:$0xff]  ;;  %v373_v29 = vld [vmem:[%s1341_s4 + $0x60] sm:$0xf]  ;;  %v372_v31 = vld [vmem:[%s1341_s4 + $0x58] sm:$0xff]  ;;  %s930_s24 = scalar_lea.vmem %s880_s23, 128  ;;  %p935_p1 = scmp.lt.s32.totalorder %s880_s23, %s880_s23 }
  0x17   :  { %267 = vmatprep.mubr.f32.mxu0 %v952_v5  ;;  %89 = vperm.xlu0 %928, %v58_v22   ;;  %v371_v32 = vld [vmem:[%s1341_s4 + $0x50] sm:$0xff]  ;;  %v48_v33 = vld [vmem:[%s1338_s1 + $0x38] sm:$0xff]  ;;  %v370_v34 = vld [vmem:[%s1341_s4 + $0x48] sm:$0xff]  ;;  %p931_p0 = scmp.ne.s32.totalorder %s880_s23, %s930_s24  ;;  %p936_p2 = scmp.lt.s32.totalorder %s930_s24, %s930_s24 }
  0x18   :  { %84 = vperm.xlu1 %929, %v57_v23   ;;  %v369_v35 = vld [vmem:[%s1341_s4 + $0x40] sm:$0xff]  ;;  %v368_v37 = vld [vmem:[%s1341_s4 + $0x38] sm:$0xff]  ;;  %v367_v38 = vld [vmem:[%s1341_s4 + $0x30] sm:$0xff] }
  0x19   :  { %v49_v36 = vld [vmem:[%s1338_s1 + $0x40] sm:$0xff]  ;;  %v50_v39 = vld [vmem:[%s1338_s1 + $0x48] sm:$0xff]  ;;  %v51_v42 = vld [vmem:[%s1338_s1 + $0x50] sm:$0xff]  ;;  %p937_p3 = por %p936_p2, %p935_p1 }
  0x1a   :  { %893 = vmatmul.mubr.msk.f32.gmra.mxu0 %vm132_vm1, %v45_v24  ;;  %v366_v40 = vld [vmem:[%s1341_s4 + $0x28] sm:$0xff]  ;;  %v365_v41 = vld [vmem:[%s1341_s4 + $0x20] sm:$0xff]  ;;  %v364_v43 = vld [vmem:[%s1341_s4 + $0x18] sm:$0xff] }
  0x1b   :  { %273 = vmatprep.mubr.f32.mxu0 %v952_v5  ;;  %79 = vperm.xlu0 %928, %v56_v25   ;;  %v363_v44 = vld [vmem:[%s1341_s4 + $0x10] sm:$0xff]  ;;  %v52_v45 = vld [vmem:[%s1338_s1 + $0x58] sm:$0xff]  ;;  %v362_v46 = vld [vmem:[%s1341_s4 + $0x8] sm:$0xff]  ;;  %p938_p4 = pnand %p937_p3, %p931_p0 }
  0x1c   :  { %74 = vperm.xlu1 %929, %v55_v26   ;;  %v361_v47 = vld [vmem:[%s1341_s4] sm:$0xff]  ;;  %v660_v49 = vld [vmem:[%s1343_s6 + $0x10] sm:$0xf]  ;;  %v659_v50 = vld [vmem:[%s1343_s6 + $0x8] sm:$0xff] }
  0x1d   :  { %v53_v48 = vld [vmem:[%s1338_s1 + $0x60] sm:$0xf] }
  0x1e   :  { %894 = vmatmul.mubr.msk.f32.gmra.mxu0 %vm132_vm1, %v46_v27  ;;  %v658_v51 = vld [vmem:[%s1343_s6] sm:$0xff] }
  0x1f   :  { %279 = vmatprep.mubr.f32.mxu0 %v952_v5  ;;  %69 = vperm.xlu0 %928, %v54_v28   ;;  %v781_v52 = vld [vmem:[%s1345_s8] sm:$0xf] }
  0x20   :  { %436 = vperm.xlu1 %929, %v373_v29  }
  0x22   :  { %895 = vmatmul.mubr.msk.f32.gmra.mxu0 %vm132_vm1, %v47_v30 }
  0x23   :  { %285 = vmatprep.mubr.f32.mxu0 %v952_v5  ;;  %431 = vperm.xlu0 %928, %v372_v31  }
  0x24   :  { %426 = vperm.xlu1 %929, %v371_v32  }
  0x26   :  { %896 = vmatmul.mubr.msk.f32.gmra.mxu0 %vm132_vm1, %v48_v33 }
  0x27   :  { %291 = vmatprep.mubr.f32.mxu0 %v952_v5  ;;  %421 = vperm.xlu0 %928, %v370_v34  }
  0x28   :  { %416 = vperm.xlu1 %929, %v369_v35  }
  0x2a   :  { %897 = vmatmul.mubr.msk.f32.gmra.mxu0 %vm132_vm1, %v49_v36 }
  0x2b   :  { %297 = vmatprep.mubr.f32.mxu0 %v952_v5  ;;  %411 = vperm.xlu0 %928, %v368_v37  }
  0x2c   :  { %406 = vperm.xlu1 %929, %v367_v38  }
  0x2e   :  { %898 = vmatmul.mubr.msk.f32.gmra.mxu0 %vm132_vm1, %v50_v39 }
  0x2f   :  { %303 = vmatprep.mubr.f32.mxu0 %v952_v5  ;;  %401 = vperm.xlu0 %928, %v366_v40  }
  0x30   :  { %396 = vperm.xlu1 %929, %v365_v41  }
  0x32   :  { %899 = vmatmul.mubr.msk.f32.gmra.mxu0 %vm132_vm1, %v51_v42 }
  0x33   :  { %309 = vmatprep.mubr.f32.mxu0 %v952_v5  ;;  %391 = vperm.xlu0 %928, %v364_v43  }
  0x34   :  { %386 = vperm.xlu1 %929, %v363_v44  }
  0x36   :  { %900 = vmatmul.mubr.msk.f32.gmra.mxu0 %vm132_vm1, %v52_v45 }
  0x37   :  { %315 = vmatprep.mubr.f32.mxu0 %v952_v5  ;;  %381 = vperm.xlu0 %928, %v362_v46  }
  0x38   :  { %376 = vperm.xlu1 %929, %v361_v47  }
  0x3a   :  { %901 = vmatmul.mubr.msk.f32.gmra.mxu0 %vm132_vm1, %v53_v48 }
  0x3b   :  { %755 = vmatprep.mubr.f32.mxu0 %v952_v5  ;;  %673 = vperm.xlu0 %928, %v660_v49  }
  0x3c   :  { %668 = vperm.xlu1 %929, %v659_v50  }
  0x3f   :  { %663 = vperm.xlu0 %928, %v658_v51  }
  0x40   :  { %784 = vperm.xlu1 %929, %v781_v52  }
  0x7f   :  { %v120_v11 = vpop.permute.xlu1 %119 }
  0x81   :  { %v130_v8 = vpop.permute.xlu0 %129 }
  0x83   :  { %v115_v16 = vpop.permute.xlu1 %114 }
  0x85   :  { %v125_v13 = vpop.permute.xlu0 %124 }
  0x87   :  { %v105_v22 = vpop.permute.xlu1 %104 }
  0x89   :  { %v110_v18 = vpop.permute.xlu0 %109 }
  0x8e   :  { %v100_v26 = vpop.permute.xlu0 %99 }
  0x8f   :  { %v95_v35 = vpop.permute.xlu1 %94 }
  0x92   :  { %v90_v40 = vpop.permute.xlu0 %89 }
  0x93   :  { %v85_v49 = vpop.permute.xlu1 %84 }
  0xca   :  { %v1186_v53 = vpop.f32.mrf.mxu0 }
  0xcc   :  { %v1188_v54 = vpop.f32.mrf.mxu0 }
  0xce   :  { %v1190_v55 = vpop.f32.mrf.mxu0 }
  0xd0   :  { %v1192_v56 = vpop.f32.mrf.mxu0 }
  0xd2   :  { %v1194_v57 = vpop.f32.mrf.mxu0 }
  0xd4   :  { %v1196_v58 = vpop.f32.mrf.mxu0 }
  0xd6   :  { %v1198_v59 = vpop.f32.mrf.mxu0 }
  0xd8   :  { %v1200_v60 = vpop.f32.mrf.mxu0 }
  0xda   :  { %v1202_v61 = vpop.f32.mrf.mxu0 }
  0xdc   :  { %v1204_v62 = vpop.f32.mrf.mxu0 }
  0xde   :  { %v275_v63 = vpop.f32.mrf.mxu0 }
  0xdf   :  { %v276_v52 = vadd.f32 %v275_v63, %v95_v35  ;;  %v75_v63 = vpop.permute.xlu1 %74 }
  0xe0   :  { %v277_v0 = vpop.f32.mrf.mxu0 }
  0xe1   :  { %v278_v50 = vadd.f32 %v277_v0, %v95_v35  ;;  %v264_v0 = vadd.f32 %v1198_v59, %v85_v49 }
  0xe2   :  { %v281_v1 = vpop.f32.mrf.mxu0 }
  0xe3   :  { %v282_v47 = vadd.f32 %v281_v1, %v100_v26  ;;  %v266_v1 = vadd.f32 %v1200_v60, %v85_v49  ;;  %v252_v60 = vadd.f32 %v1190_v55, %v75_v63  ;;  %v348_v55 = vld [vmem:[%s1340_s3] sm:$0xff]  ;;  %v437_v49 = vpop.permute.xlu1 %436 }
  0xe4   :  { %v283_v2 = vpop.f32.mrf.mxu0 }
  0xe5   :  { %v284_v45 = vadd.f32 %v283_v2, %v100_v26  ;;  %v334_v2 = vmax.f32 %v282_v47, 0.0  ;;  %v356_v26 = vld [vmem:[%s1340_s3 + $0x40] sm:$0xff] }
  0xe6   :  { %v287_v3 = vpop.f32.mrf.mxu0 }
  0xe7   :  { %v288_v43 = vadd.f32 %v287_v3, %v105_v22  ;;  %v270_v3 = vadd.f32 %v1202_v61, %v90_v40 }
  0xe8   :  { %v289_v4 = vpop.f32.mrf.mxu0 }
  0xe9   :  { %v290_v41 = vadd.f32 %v289_v4, %v105_v22  ;;  %v272_v4 = vadd.f32 %v1204_v62, %v90_v40  ;;  %v352_v22 = vld [vmem:[%s1340_s3 + $0x20] sm:$0xff] }
  0xea   :  { %v293_v6 = vpop.f32.mrf.mxu0 }
  0xeb   :  { %v294_v38 = vadd.f32 %v293_v6, %v110_v18  ;;  %v337_v51 = vmax.f32 %v290_v41, 0.0  ;;  %v336_v6 = vmax.f32 %v288_v43, 0.0 }
  0xec   :  { %v295_v7 = vpop.f32.mrf.mxu0 }
  0xed   :  { %v296_v36 = vadd.f32 %v295_v7, %v110_v18  ;;  %v338_v48 = vmax.f32 %v294_v38, 0.0  ;;  %v80_v7 = vpop.permute.xlu0 %79 }
  0xee   :  { %v299_v9 = vpop.f32.mrf.mxu0  ;;  %v258_v62 = vadd.f32 %v1194_v57, %v80_v7 }
  0xef   :  { %v300_v33 = vadd.f32 %v299_v9, %v115_v16  ;;  %v339_v46 = vmax.f32 %v296_v36, 0.0  ;;  %v333_v9 = vmax.f32 %v278_v50, 0.0 }
  0xf0   :  { %v301_v10 = vpop.f32.mrf.mxu0  ;;  %v326_v18 = vmax.f32 %v258_v62, 0.0 }
  0xf1   :  { %v302_v31 = vadd.f32 %v301_v10, %v115_v16  ;;  %v340_v44 = vmax.f32 %v300_v33, 0.0  ;;  %v332_v10 = vmax.f32 %v276_v52, 0.0  ;;  %v70_v61 = vpop.permute.xlu0 %69  ;;  %v328_v16 = vmax.f32 %v264_v0, 0.0 }
  0xf2   :  { %v305_v12 = vpop.f32.mrf.mxu0  ;;  %v248_v59 = vadd.f32 %v1188_v54, %v70_v61  ;;  %v350_v54 = vld [vmem:[%s1340_s3 + $0x10] sm:$0xff] }
  0xf3   :  { %v306_v29 = vadd.f32 %v305_v12, %v120_v11  ;;  %v341_v42 = vmax.f32 %v302_v31, 0.0  ;;  %v331_v12 = vmax.f32 %v272_v4, 0.0 }
  0xf4   :  { %v307_v14 = vpop.f32.mrf.mxu0 }
  0xf5   :  { %v308_v27 = vadd.f32 %v307_v14, %v120_v11  ;;  %v342_v39 = vmax.f32 %v306_v29, 0.0  ;;  %v260_v11 = vadd.f32 %v1196_v58, %v80_v7  ;;  %v254_v14 = vadd.f32 %v1192_v56, %v75_v63  ;;  %v359_v29 = vld [vmem:[%s1340_s3 + $0x58] sm:$0xff]  ;;  %v432_v52 = vpop.permute.xlu0 %431  ;;  %v427_v7 = vpop.permute.xlu1 %426 }
  0xf6   :  { %v311_v15 = vpop.f32.mrf.mxu0  ;;  %v246_v58 = vadd.f32 %v1186_v53, %v70_v61  ;;  %v349_v53 = vld [vmem:[%s1340_s3 + $0x8] sm:$0xff] }
  0xf7   :  { %v312_v25 = vadd.f32 %v311_v15, %v125_v13  ;;  %v343_v37 = vmax.f32 %v308_v27, 0.0  ;;  %v329_v15 = vmax.f32 %v266_v1, 0.0  ;;  %v325_v57 = vmax.f32 %v254_v14, 0.0  ;;  %v357_v27 = vld [vmem:[%s1340_s3 + $0x48] sm:$0xff] }
  0xf8   :  { %v313_v17 = vpop.f32.mrf.mxu0  ;;  %v322_v56 = vmax.f32 %v246_v58, 0.0 }
  0xf9   :  { %v314_v23 = vadd.f32 %v313_v17, %v125_v13  ;;  %v344_v34 = vmax.f32 %v312_v25, 0.0  ;;  %v330_v13 = vmax.f32 %v270_v3, 0.0  ;;  %v327_v17 = vmax.f32 %v260_v11, 0.0  ;;  %v355_v25 = vld [vmem:[%s1340_s3 + $0x38] sm:$0xff]  ;;  %v422_v3 = vpop.permute.xlu0 %421  ;;  %v417_v1 = vpop.permute.xlu1 %416 }
  0xfa   :  { %v317_v19 = vpop.f32.mrf.mxu0 }
  0xfb   :  { %v318_v20 = vadd.f32 %v317_v19, %v130_v8  ;;  %v345_v32 = vmax.f32 %v314_v23, 0.0  ;;  %v324_v19 = vmax.f32 %v252_v60, 0.0  ;;  %v353_v23 = vld [vmem:[%s1340_s3 + $0x28] sm:$0xff] }
  0xfc   :  { %v319_v21 = vpop.f32.mrf.mxu0 }
  0xfd   :  { %v320_v24 = vadd.f32 %v319_v21, %v130_v8  ;;  %v346_v30 = vmax.f32 %v318_v20, 0.0  ;;  %v335_v8 = vmax.f32 %v284_v45, 0.0  ;;  %v323_v20 = vmax.f32 %v248_v59, 0.0  ;;  %v351_v21 = vld [vmem:[%s1340_s3 + $0x18] sm:$0xff]  ;;  %v407_v14 = vpop.permute.xlu1 %406 }
  0xff   :  { %v347_v28 = vmax.f32 %v320_v24, 0.0  ;;  %v354_v24 = vld [vmem:[%s1340_s3 + $0x30] sm:$0xff] }
 0x101   :  { %902 = vmatprep.subr.msk.mxu1 %vm479_vm2, %v347_v28  ;;  %v358_v28 = vld [vmem:[%s1340_s3 + $0x50] sm:$0xff] }
 0x102   :  { %903 = vmatpush1.msk.msra.mxu1 %vm479_vm2, %v346_v30  ;;  %v360_v30 = vld [vmem:[%s1340_s3 + $0x60] sm:$0xf] }
 0x103   :  { %494 = vmatprep.subr.mxu1 %v345_v32 }
 0x104   :  { %495 = vmatpush1.msra.mxu1 %v344_v34 }
 0x105   :  { %496 = vmatprep.subr.mxu1 %v343_v37 }
 0x106   :  { %497 = vmatpush1.msra.mxu1 %v342_v39 }
 0x107   :  { %498 = vmatprep.subr.mxu1 %v341_v42 }
 0x108   :  { %499 = vmatpush1.msra.mxu1 %v340_v44 }
 0x109   :  { %500 = vmatprep.subr.mxu1 %v339_v46 }
 0x10a   :  { %501 = vmatpush1.msra.mxu1 %v338_v48 }
 0x10b   :  { %502 = vmatprep.subr.mxu1 %v337_v51 }
 0x10c   :  { %503 = vmatpush1.msra.mxu1 %v336_v6 }
 0x10d   :  { %504 = vmatprep.subr.mxu1 %v335_v8 }
 0x10e   :  { %505 = vmatpush1.msra.mxu1 %v334_v2 }
 0x10f   :  { %506 = vmatprep.subr.mxu1 %v333_v9 }
 0x110   :  { %507 = vmatpush1.msra.mxu1 %v332_v10 }
 0x111   :  { %508 = vmatprep.subr.mxu1 %v331_v12  ;;  %v412_v12 = vpop.permute.xlu0 %411 }
 0x112   :  { %509 = vmatpush1.msra.mxu1 %v330_v13 }
 0x113   :  { %510 = vmatprep.subr.mxu1 %v329_v15 }
 0x114   :  { %511 = vmatpush1.msra.mxu1 %v328_v16 }
 0x115   :  { %512 = vmatprep.subr.mxu1 %v327_v17 }
 0x116   :  { %513 = vmatpush1.msra.mxu1 %v326_v18 }
 0x117   :  { %514 = vmatprep.subr.mxu1 %v325_v57 }
 0x118   :  { %515 = vmatpush1.msra.mxu1 %v324_v19  ;;  %v402_v19 = vpop.permute.xlu0 %401 }
 0x119   :  { %516 = vmatprep.subr.mxu1 %v323_v20 }
 0x11a   :  { %517 = vmatpush1.msra.mxu1 %v322_v56 }
 0x11b   :  { %904 = vmatmul.mubr.msk.f32.vlgmr.msra.gmra.mxu1 %vm439_vm3, %v348_v55 }
 0x11c   :  { %556 = vmatprep.mubr.f32.mxu1 %v952_v5 }
 0x11f   :  { %905 = vmatmul.mubr.msk.f32.gmra.mxu1 %vm439_vm3, %v349_v53 }
 0x120   :  { %562 = vmatprep.mubr.f32.mxu1 %v952_v5 }
 0x123   :  { %906 = vmatmul.mubr.msk.f32.gmra.mxu1 %vm439_vm3, %v350_v54  ;;  %v397_v54 = vpop.permute.xlu1 %396 }
 0x124   :  { %568 = vmatprep.mubr.f32.mxu1 %v952_v5 }
 0x127   :  { %907 = vmatmul.mubr.msk.f32.gmra.mxu1 %vm439_vm3, %v351_v21 }
 0x128   :  { %574 = vmatprep.mubr.f32.mxu1 %v952_v5 }
 0x12b   :  { %908 = vmatmul.mubr.msk.f32.gmra.mxu1 %vm439_vm3, %v352_v22 }
 0x12c   :  { %580 = vmatprep.mubr.f32.mxu1 %v952_v5 }
 0x12f   :  { %909 = vmatmul.mubr.msk.f32.gmra.mxu1 %vm439_vm3, %v353_v23 }
 0x130   :  { %586 = vmatprep.mubr.f32.mxu1 %v952_v5 }
 0x133   :  { %910 = vmatmul.mubr.msk.f32.gmra.mxu1 %vm439_vm3, %v354_v24 }
 0x134   :  { %592 = vmatprep.mubr.f32.mxu1 %v952_v5 }
 0x137   :  { %911 = vmatmul.mubr.msk.f32.gmra.mxu1 %vm439_vm3, %v355_v25 }
 0x138   :  { %598 = vmatprep.mubr.f32.mxu1 %v952_v5 }
 0x13b   :  { %912 = vmatmul.mubr.msk.f32.gmra.mxu1 %vm439_vm3, %v356_v26 }
 0x13c   :  { %604 = vmatprep.mubr.f32.mxu1 %v952_v5 }
 0x13f   :  { %913 = vmatmul.mubr.msk.f32.gmra.mxu1 %vm439_vm3, %v357_v27 }
 0x140   :  { %610 = vmatprep.mubr.f32.mxu1 %v952_v5 }
 0x143   :  { %914 = vmatmul.mubr.msk.f32.gmra.mxu1 %vm439_vm3, %v358_v28 }
 0x144   :  { %616 = vmatprep.mubr.f32.mxu1 %v952_v5 }
 0x147   :  { %915 = vmatmul.mubr.msk.f32.gmra.mxu1 %vm439_vm3, %v359_v29  ;;  %v392_v29 = vpop.permute.xlu0 %391 }
 0x148   :  { %622 = vmatprep.mubr.f32.mxu1 %v952_v5 }
 0x14b   :  { %916 = vmatmul.mubr.msk.f32.gmra.mxu1 %vm439_vm3, %v360_v30 }
 0x1db   :  { %v1282_v31 = vpop.f32.mrf.mxu1 }
 0x1dd   :  { %v1284_v32 = vpop.f32.mrf.mxu1 }
 0x1df   :  { %v1286_v33 = vpop.f32.mrf.mxu1 }
 0x1e1   :  { %v1288_v34 = vpop.f32.mrf.mxu1 }
 0x1e3   :  { %v1290_v35 = vpop.f32.mrf.mxu1 }
 0x1e5   :  { %v1292_v36 = vpop.f32.mrf.mxu1 }
 0x1e7   :  { %v1294_v37 = vpop.f32.mrf.mxu1 }
 0x1e9   :  { %v1296_v38 = vpop.f32.mrf.mxu1 }
 0x1eb   :  { %v1298_v39 = vpop.f32.mrf.mxu1 }
 0x1ed   :  { %v1300_v40 = vpop.f32.mrf.mxu1 }
 0x1ef   :  { %v582_v41 = vpop.f32.mrf.mxu1 }
 0x1f0   :  { %v583_v30 = vadd.f32 %v582_v41, %v402_v19 }
 0x1f1   :  { %v584_v42 = vpop.f32.mrf.mxu1 }
 0x1f2   :  { %v585_v27 = vadd.f32 %v584_v42, %v402_v19  ;;  %v571_v42 = vadd.f32 %v1294_v37, %v392_v29 }
 0x1f3   :  { %v588_v43 = vpop.f32.mrf.mxu1 }
 0x1f4   :  { %v589_v25 = vadd.f32 %v588_v43, %v407_v14  ;;  %v573_v43 = vadd.f32 %v1296_v38, %v392_v29 }
 0x1f5   :  { %v590_v44 = vpop.f32.mrf.mxu1 }
 0x1f6   :  { %v591_v23 = vadd.f32 %v590_v44, %v407_v14  ;;  %v641_v44 = vmax.f32 %v589_v25, 0.0 }
 0x1f7   :  { %v594_v45 = vpop.f32.mrf.mxu1 }
 0x1f8   :  { %v595_v21 = vadd.f32 %v594_v45, %v412_v12  ;;  %v387_v45 = vpop.permute.xlu1 %386 }
 0x1f9   :  { %v596_v46 = vpop.f32.mrf.mxu1  ;;  %v567_v41 = vadd.f32 %v1292_v36, %v387_v45 }
 0x1fa   :  { %v597_v55 = vadd.f32 %v596_v46, %v412_v12  ;;  %v579_v46 = vadd.f32 %v1300_v40, %v397_v54  ;;  %v382_v40 = vpop.permute.xlu0 %381 }
 0x1fb   :  { %v600_v47 = vpop.f32.mrf.mxu1 }
 0x1fc   :  { %v601_v20 = vadd.f32 %v600_v47, %v417_v1  ;;  %v644_v28 = vmax.f32 %v597_v55, 0.0  ;;  %v643_v47 = vmax.f32 %v595_v21, 0.0  ;;  %v377_v38 = vpop.permute.xlu1 %376 }
 0x1fd   :  { %v602_v48 = vpop.f32.mrf.mxu1  ;;  %v555_v37 = vadd.f32 %v1284_v32, %v377_v38  ;;  %v553_v36 = vadd.f32 %v1282_v31, %v377_v38  ;;  %v656_v31 = vld [vmem:[%s1342_s5 + $0x8] sm:$0xff]  ;;  %v657_v32 = vld [vmem:[%s1342_s5 + $0x10] sm:$0xf] }
 0x1fe   :  { %v603_v18 = vadd.f32 %v602_v48, %v417_v1  ;;  %v645_v26 = vmax.f32 %v601_v20, 0.0  ;;  %v642_v48 = vmax.f32 %v591_v23, 0.0  ;;  %v674_v12 = vpop.permute.xlu0 %673 }
 0x1ff   :  { %v606_v50 = vpop.f32.mrf.mxu1 }
 0x200   :  { %v607_v17 = vadd.f32 %v606_v50, %v422_v3  ;;  %v646_v24 = vmax.f32 %v603_v18, 0.0  ;;  %v640_v50 = vmax.f32 %v585_v27, 0.0 }
 0x201   :  { %v608_v51 = vpop.f32.mrf.mxu1 }
 0x202   :  { %v609_v16 = vadd.f32 %v608_v51, %v422_v3  ;;  %v647_v22 = vmax.f32 %v607_v17, 0.0  ;;  %v639_v51 = vmax.f32 %v583_v30, 0.0  ;;  %v635_v3 = vmax.f32 %v571_v42, 0.0 }
 0x203   :  { %v612_v6 = vpop.f32.mrf.mxu1 }
 0x204   :  { %v613_v15 = vadd.f32 %v612_v6, %v427_v7  ;;  %v648_v53 = vmax.f32 %v609_v16, 0.0  ;;  %v565_v6 = vadd.f32 %v1290_v35, %v387_v45 }
 0x205   :  { %v614_v4 = vpop.f32.mrf.mxu1 }
 0x206   :  { %v615_v13 = vadd.f32 %v614_v4, %v427_v7  ;;  %v649_v56 = vmax.f32 %v613_v15, 0.0  ;;  %v636_v4 = vmax.f32 %v573_v43, 0.0  ;;  %v633_v1 = vmax.f32 %v565_v6, 0.0 }
 0x207   :  { %v618_v8 = vpop.f32.mrf.mxu1 }
 0x208   :  { %v619_v62 = vadd.f32 %v618_v8, %v432_v52  ;;  %v650_v57 = vmax.f32 %v615_v13, 0.0  ;;  %v559_v8 = vadd.f32 %v1286_v33, %v382_v40  ;;  %v655_v33 = vld [vmem:[%s1342_s5] sm:$0xff] }
 0x209   :  { %v620_v2 = vpop.f32.mrf.mxu1 }
 0x20a   :  { %v621_v63 = vadd.f32 %v620_v2, %v432_v52  ;;  %v651_v58 = vmax.f32 %v619_v62, 0.0  ;;  %v638_v52 = vmax.f32 %v579_v46, 0.0  ;;  %v634_v2 = vmax.f32 %v567_v41, 0.0 }
 0x20b   :  { %v624_v9 = vpop.f32.mrf.mxu1 }
 0x20c   :  { %v625_v0 = vadd.f32 %v624_v9, %v437_v49  ;;  %v652_v59 = vmax.f32 %v621_v63, 0.0  ;;  %v631_v9 = vmax.f32 %v559_v8, 0.0 }
 0x20d   :  { %v626_v10 = vpop.f32.mrf.mxu1 }
 0x20e   :  { %v627_v11 = vadd.f32 %v626_v10, %v437_v49  ;;  %v653_v60 = vmax.f32 %v625_v0, 0.0  ;;  %v577_v49 = vadd.f32 %v1298_v39, %v397_v54  ;;  %v561_v39 = vadd.f32 %v1288_v34, %v382_v40 }
 0x20f   :  { %v630_v34 = vmax.f32 %v555_v37, 0.0  ;;  %v629_v0 = vmax.f32 %v553_v36, 0.0 }
 0x210   :  { %v654_v61 = vmax.f32 %v627_v11, 0.0  ;;  %v637_v7 = vmax.f32 %v577_v49, 0.0  ;;  %v632_v35 = vmax.f32 %v561_v39, 0.0 }
 0x212   :  { %917 = vmatprep.subr.msk.mxu0 %vm479_vm2, %v654_v61  ;;  %v669_v61 = vpop.permute.xlu1 %668 }
 0x213   :  { %918 = vmatpush1.msk.msra.mxu0 %vm479_vm2, %v653_v60 }
 0x214   :  { %699 = vmatprep.subr.mxu0 %v652_v59  ;;  %v664_v59 = vpop.permute.xlu0 %663 }
 0x215   :  { %700 = vmatpush1.msra.mxu0 %v651_v58 }
 0x216   :  { %701 = vmatprep.subr.mxu0 %v650_v57  ;;  %v785_v21 = vpop.permute.xlu1 %784 }
 0x217   :  { %702 = vmatpush1.msra.mxu0 %v649_v56 }
 0x218   :  { %703 = vmatprep.subr.mxu0 %v648_v53  ;;  %v780_v53 = vld [vmem:[%s1344_s7] sm:$0xf] }
 0x219   :  { %704 = vmatpush1.msra.mxu0 %v647_v22 }
 0x21a   :  { %705 = vmatprep.subr.mxu0 %v646_v24 }
 0x21b   :  { %706 = vmatpush1.msra.mxu0 %v645_v26 }
 0x21c   :  { %707 = vmatprep.subr.mxu0 %v644_v28 }
 0x21d   :  { %708 = vmatpush1.msra.mxu0 %v643_v47 }
 0x21e   :  { %709 = vmatprep.subr.mxu0 %v642_v48 }
 0x21f   :  { %710 = vmatpush1.msra.mxu0 %v641_v44 }
 0x220   :  { %711 = vmatprep.subr.mxu0 %v640_v50 }
 0x221   :  { %712 = vmatpush1.msra.mxu0 %v639_v51 }
 0x222   :  { %713 = vmatprep.subr.mxu0 %v638_v52 }
 0x223   :  { %714 = vmatpush1.msra.mxu0 %v637_v7 }
 0x224   :  { %715 = vmatprep.subr.mxu0 %v636_v4 }
 0x225   :  { %716 = vmatpush1.msra.mxu0 %v635_v3 }
 0x226   :  { %717 = vmatprep.subr.mxu0 %v634_v2 }
 0x227   :  { %718 = vmatpush1.msra.mxu0 %v633_v1 }
 0x228   :  { %719 = vmatprep.subr.mxu0 %v632_v35 }
 0x229   :  { %720 = vmatpush1.msra.mxu0 %v631_v9 }
 0x22a   :  { %721 = vmatprep.subr.mxu0 %v630_v34 }
 0x22b   :  { %722 = vmatpush1.msra.mxu0 %v629_v0 }
 0x22c   :  { %919 = vmatmul.mubr.msk.f32.vlgmr.msra.gmra.mxu0 %vm439_vm3, %v655_v33 }
 0x22d   :  { %761 = vmatprep.mubr.f32.mxu0 %v952_v5 }
 0x230   :  { %920 = vmatmul.mubr.msk.f32.gmra.mxu0 %vm439_vm3, %v656_v31 }
 0x231   :  { %767 = vmatprep.mubr.f32.mxu0 %v952_v5 }
 0x234   :  { %921 = vmatmul.mubr.msk.f32.gmra.mxu0 %vm439_vm3, %v657_v32 }
 0x235   :  { %861 = vmatprep.mubr.f32.mxu0 %v952_v5 }
 0x2ec   :  { %v757_v10 = vpop.f32.mrf.mxu0 }
 0x2ed   :  { %v758_v57 = vadd.f32 %v757_v10, %v664_v59 }
 0x2ee   :  { %v759_v63 = vpop.f32.mrf.mxu0 }
 0x2ef   :  { %v760_v58 = vadd.f32 %v759_v63, %v664_v59  ;;  %v774_v55 = vmax.f32 %v758_v57, 0.0 }
 0x2f0   :  { %v763_v11 = vpop.f32.mrf.mxu0 }
 0x2f1   :  { %v764_v17 = vadd.f32 %v763_v11, %v669_v61  ;;  %v775_v56 = vmax.f32 %v760_v58, 0.0 }
 0x2f2   :  { %v765_v62 = vpop.f32.mrf.mxu0 }
 0x2f3   :  { %v766_v60 = vadd.f32 %v765_v62, %v669_v61  ;;  %v776_v5 = vmax.f32 %v764_v17, 0.0 }
 0x2f4   :  { %v769_v13 = vpop.f32.mrf.mxu0 }
 0x2f5   :  { %v770_v14 = vadd.f32 %v769_v13, %v674_v12  ;;  %v777_v20 = vmax.f32 %v766_v60, 0.0 }
 0x2f6   :  { %v771_v15 = vpop.f32.mrf.mxu0 }
 0x2f7   :  { %v772_v16 = vadd.f32 %v771_v15, %v674_v12  ;;  %v778_v19 = vmax.f32 %v770_v14, 0.0 }
 0x2f9   :  { %v779_v18 = vmax.f32 %v772_v16, 0.0 }
 0x2fb   :  { %922 = vmatprep.subr.msk.mxu0 %vm479_vm2, %v779_v18 }
 0x2fc   :  { %923 = vmatpush1.msk.msra.mxu0 %vm479_vm2, %v778_v19 }
 0x2fd   :  { %825 = vmatprep.subr.mxu0 %v777_v20 }
 0x2fe   :  { %826 = vmatpush1.msra.mxu0 %v776_v5 }
 0x2ff   :  { %827 = vmatprep.subr.mxu0 %v775_v56 }
 0x300   :  { %828 = vmatpush1.msra.mxu0 %v774_v55 }
 0x301   :  { %924 = vmatmul.mubr.msk.f32.vlgmr.msra.gmra.mxu0 %vm787_vm4, %v780_v53 }
 0x3c1   :  { %v863_v54 = vpop.f32.mrf.mxu0 }
 0x3c2   :  { %v864_v23 = vadd.f32 %v863_v54, %v785_v21 }
 0x3c3   :  { %v865_v22 = vpop.f32.mrf.mxu0 }
 0x3c4   :  { %v866_v24 = vadd.f32 %v865_v22, %v785_v21 }
 0x3c6   :  { %v870_v25 = vcombine.low %v864_v23, %v866_v24 }
 0x3c8   :  { %872 = vst [vmem:[#allocation2] sm:$0xff] %v870_v25 }
 0x3c9   :  { %941 = shalt.err (!%p938_p4)
}
 0x3ca   :  { %882 = dma.vmem_to_hbm [thread:$0]  %s880_s23, 128, %s1346_s9, [#allocation3]  }
 0x3cb   :  { %950 = dma.done.wait [#allocation3], 128  }
 0x3cc   :  { %951 = vsyncadd [#allocation3], 4294967168 }
 0x3cd   :  { %886 = vsyncpa [#allocation3], 1 }

</bundles_post_ra>
